<compile_context>
chip_gen: v5e
topology: v5e:2x2
jax: 0.10.0
libtpu: 0.0.40
codegen_flags: <defaults>
</compile_context>

<pallas_src>
import functools

import jax
import jax.numpy as jnp
from jax import lax
from jax.experimental import pallas as pl
from jax.experimental.pallas import tpu as pltpu

EPS = 1e-12  # F.normalize default eps


def _moco_loss_kernel(q_ref, k_ref, queue_ref, loss_ref, kn_ref,
                      qs_sc, m_sc, s_sc, t_sc, *, temperature, batch_size):
    i = pl.program_id(0)
    n_tiles = pl.num_programs(0)

    # ---- init (grid step 0): normalize q/k, positives block, seed logsumexp ----
    @pl.when(i == 0)
    def _init():
        q = q_ref[...].astype(jnp.float32)                       # (B, D)
        k = k_ref[...].astype(jnp.float32)                       # (B, D)
        # F.normalize(x, dim=1) == x * rsqrt(max(||x||^2, eps^2))
        q_n = q * lax.rsqrt(jnp.maximum(jnp.sum(q * q, axis=1, keepdims=True),
                                        EPS * EPS))
        k_n = k * lax.rsqrt(jnp.maximum(jnp.sum(k * k, axis=1, keepdims=True),
                                        EPS * EPS))
        kn_ref[...] = k_n.astype(kn_ref.dtype)
        # Fold 1/temperature into the query operand once.
        qs = q_n * (1.0 / temperature)
        qs_sc[...] = qs

        # Positives block: (B, B) = qs @ k_n^T, contraction on last dims.
        sim_qk = lax.dot_general(qs, k_n, (((1,), (1,)), ((), ())),
                                 preferred_element_type=jnp.float32)
        m0 = jnp.max(sim_qk, axis=1, keepdims=True)               # (B, 1)
        m_sc[...] = m0
        s_sc[...] = jnp.sum(jnp.exp(sim_qk - m0), axis=1, keepdims=True)
        t_sc[...] = sim_qk[:, 0:1]                                # logits[:, 0]

    # ---- per-tile negatives: online logsumexp over this queue tile ----
    mem = queue_ref[...].astype(jnp.float32)                      # (TM, D)
    sim_neg = lax.dot_general(qs_sc[...], mem, (((1,), (1,)), ((), ())),
                              preferred_element_type=jnp.float32)  # (B, TM)
    m_tile = jnp.max(sim_neg, axis=1, keepdims=True)
    m_new = jnp.maximum(m_sc[...], m_tile)
    s_sc[...] = (s_sc[...] * jnp.exp(m_sc[...] - m_new)
                 + jnp.sum(jnp.exp(sim_neg - m_new), axis=1, keepdims=True))
    m_sc[...] = m_new

    # ---- finalize (last grid step): mean_i(lse_i - target_i) ----
    @pl.when(i == n_tiles - 1)
    def _finalize():
        lse = m_sc[...] + jnp.log(s_sc[...])                      # (B, 1)
        per_row = lse - t_sc[...]                                 # (B, 1)
        loss_ref[...] = jnp.sum(per_row, axis=0, keepdims=True) / float(batch_size)


def _pick_queue_tile(m, block_m):
    """Largest sublane-aligned tile that evenly divides M (else whole queue)."""
    for cand in (block_m, 2048, 1024, 512, 256, 128, 64, 32, 16, 8):
        if cand <= m and m % cand == 0:
            return cand
    return m  # block == full array dims is always legal


def moco_loss(query, key, queue, *, temperature=0.07, update_queue=True,
              block_m=1024):
    """Returns (loss, new_queue). `new_queue` equals `queue` if update_queue=False."""
    B, D = query.shape
    M, D2 = queue.shape
    assert D == D2

    tm = _pick_queue_tile(M, block_m)
    grid = (M // tm,)

    kernel = functools.partial(_moco_loss_kernel,
                               temperature=temperature, batch_size=B)

    loss, k_n = pl.pallas_call(
        kernel,
        out_shape=(jax.ShapeDtypeStruct((1, 1), jnp.float32),
                   jax.ShapeDtypeStruct((B, D), query.dtype)),
        grid_spec=pltpu.PrefetchScalarGridSpec(
            num_scalar_prefetch=0,
            grid=grid,
            in_specs=[
                pl.BlockSpec((B, D), lambda i: (0, 0)),     # query: resident
                pl.BlockSpec((B, D), lambda i: (0, 0)),     # key:   resident
                pl.BlockSpec((tm, D), lambda i: (i, 0)),    # queue: tiled along M
            ],
            out_specs=[
                pl.BlockSpec((1, 1), lambda i: (0, 0)),     # loss (resident acc)
                pl.BlockSpec((B, D), lambda i: (0, 0)),     # normalized key
            ],
            scratch_shapes=[
                pltpu.VMEM((B, D), jnp.float32),   # q_n / temperature
                pltpu.VMEM((B, 1), jnp.float32),   # running max
                pltpu.VMEM((B, 1), jnp.float32),   # running sum-exp
                pltpu.VMEM((B, 1), jnp.float32),   # target (logits[:, 0])
            ],
        ),
        compiler_params=pltpu.CompilerParams(
            dimension_semantics=("arbitrary",),
            vmem_limit_bytes=32 * 1024 * 1024,
        ),
    )(query, key, queue)

    loss = loss[0, 0]

    if update_queue:
        # FIFO update: drop oldest B rows, append the (already normalized) keys.
        # The module's extra F.normalize over the whole new queue is a numerical
        # no-op (every row is already unit-norm), so it is skipped.
        new_queue = jnp.concatenate([queue[B:], k_n.astype(queue.dtype)], axis=0)
    else:
        new_queue = queue
    return loss, new_queue


def _reference_loss(query, key, queue, temperature):
    q = query / jnp.maximum(jnp.linalg.norm(query, axis=1, keepdims=True), EPS)
    k = key / jnp.maximum(jnp.linalg.norm(key, axis=1, keepdims=True), EPS)
    logits = jnp.concatenate([q @ k.T, q @ queue.T], axis=1) / temperature
    lse = jax.scipy.special.logsumexp(logits, axis=1)
    return jnp.mean(lse - logits[:, 0])


if __name__ == "__main__":
    B, D, M = 8, 128, 512  # embedding_dim fixed at 128 by the module; small queue
    temperature = 0.07

    rng = jax.random.PRNGKey(0)
    k_q, k_k, k_mem = jax.random.split(rng, 3)
    query = jax.random.normal(k_q, (B, D), dtype=jnp.float32)
    key = jax.random.normal(k_k, (B, D), dtype=jnp.float32)
    # register_buffer('queue', randn(M, 128)) followed by F.normalize(dim=1)
    queue = jax.random.normal(k_mem, (M, D), dtype=jnp.float32)
    queue = queue / jnp.maximum(jnp.linalg.norm(queue, axis=1, keepdims=True), EPS)

    # block_m=128 -> 4 grid steps, exercises the online-logsumexp accumulation.
    loss, new_queue = moco_loss(query, key, queue, temperature=temperature,
                                update_queue=True, block_m=128)
    loss = jax.block_until_ready(loss)
    new_queue = jax.block_until_ready(new_queue)

    ref = jax.block_until_ready(_reference_loss(query, key, queue, temperature))
    assert jnp.allclose(loss, ref, rtol=1e-4, atol=1e-5), (loss, ref)
    assert new_queue.shape == (M, D)
    # Enqueued rows must equal normalized keys; carried rows must be the old tail.
    k_n_ref = key / jnp.maximum(jnp.linalg.norm(key, axis=1, keepdims=True), EPS)
    assert jnp.allclose(new_queue[-B:], k_n_ref, rtol=1e-5, atol=1e-5)
    assert jnp.allclose(new_queue[:-B], queue[B:], rtol=1e-6, atol=1e-6)

    print("KERNEL_OK")
</pallas_src>

<mosaic_0001>
module attributes {stable_mosaic.version = 11 : i64} {
  func.func @_moco_loss_kernel(%arg0: i32, %arg1: memref<8x128xf32, #tpu.memory_space<vmem>>, %arg2: memref<8x128xf32, #tpu.memory_space<vmem>>, %arg3: memref<128x128xf32, #tpu.memory_space<vmem>>, %arg4: memref<1x1xf32, #tpu.memory_space<vmem>>, %arg5: memref<8x128xf32, #tpu.memory_space<vmem>>, %arg6: memref<8x128xf32, #tpu.memory_space<vmem>>, %arg7: memref<8x1xf32, #tpu.memory_space<vmem>>, %arg8: memref<8x1xf32, #tpu.memory_space<vmem>>, %arg9: memref<8x1xf32, #tpu.memory_space<vmem>>) attributes {dimension_semantics = [#tpu.dimension_semantics<arbitrary>], iteration_bounds = array<i64: 4>, scalar_prefetch = 0 : i64, scratch_operands = 4 : i64, tpu.core_type = #tpu.core_type<tc>, window_params = [{pipeline_mode = #tpu.pipeline_mode<synchronous>, transform_indices = @transform_0, window_bounds = array<i64: 8, 128>}, {pipeline_mode = #tpu.pipeline_mode<synchronous>, transform_indices = @transform_1, window_bounds = array<i64: 8, 128>}, {transform_indices = @transform_2, window_bounds = array<i64: 128, 128>}, {pipeline_mode = #tpu.pipeline_mode<synchronous>, transform_indices = @transform_3, window_bounds = array<i64: 1, 1>}, {pipeline_mode = #tpu.pipeline_mode<synchronous>, transform_indices = @transform_4, window_bounds = array<i64: 8, 128>}]} {
    %c0_i32 = arith.constant 0 : i32
    %0 = arith.cmpi eq, %arg0, %c0_i32 : i32
    %1 = arith.extui %0 : i1 to i32
    %c0_i32_0 = arith.constant 0 : i32
    %2 = arith.cmpi ne, %1, %c0_i32_0 : i32
    scf.if %2 {
      %c0_17 = arith.constant 0 : index
      %c0_18 = arith.constant 0 : index
      %26 = vector.load %arg1[%c0_17, %c0_18] : memref<8x128xf32, #tpu.memory_space<vmem>>, vector<8x128xf32>
      %c0_19 = arith.constant 0 : index
      %c0_20 = arith.constant 0 : index
      %27 = vector.load %arg2[%c0_19, %c0_20] : memref<8x128xf32, #tpu.memory_space<vmem>>, vector<8x128xf32>
      %28 = arith.mulf %26, %26 : vector<8x128xf32>
      %cst_21 = arith.constant dense<0.000000e+00> : vector<8xf32>
      %29 = vector.multi_reduction <add>, %28, %cst_21 [1] : vector<8x128xf32> to vector<8xf32>
      %30 = vector.shape_cast %29 : vector<8xf32> to vector<8x1xf32>
      %cst_22 = arith.constant 1.000000e-24 : f32
      %31 = vector.broadcast %cst_22 : f32 to vector<8x1xf32>
      %32 = arith.maximumf %30, %31 : vector<8x1xf32>
      %33 = math.rsqrt %32 : vector<8x1xf32>
      %34 = vector.broadcast %33 : vector<8x1xf32> to vector<8x128xf32>
      %35 = arith.mulf %26, %34 : vector<8x128xf32>
      %36 = arith.mulf %27, %27 : vector<8x128xf32>
      %cst_23 = arith.constant dense<0.000000e+00> : vector<8xf32>
      %37 = vector.multi_reduction <add>, %36, %cst_23 [1] : vector<8x128xf32> to vector<8xf32>
      %38 = vector.shape_cast %37 : vector<8xf32> to vector<8x1xf32>
      %cst_24 = arith.constant 1.000000e-24 : f32
      %39 = vector.broadcast %cst_24 : f32 to vector<8x1xf32>
      %40 = arith.maximumf %38, %39 : vector<8x1xf32>
      %41 = math.rsqrt %40 : vector<8x1xf32>
      %42 = vector.broadcast %41 : vector<8x1xf32> to vector<8x128xf32>
      %43 = arith.mulf %27, %42 : vector<8x128xf32>
      %c0_25 = arith.constant 0 : index
      %c0_26 = arith.constant 0 : index
      %44 = vector.load %arg5[%c0_25, %c0_26] : memref<8x128xf32, #tpu.memory_space<vmem>>, vector<8x128xf32>
      tpu.vector_store %arg5[%c0_25, %c0_26], %43 {strides = array<i32>} : memref<8x128xf32, #tpu.memory_space<vmem>>, vector<8x128xf32>,
      %cst_27 = arith.constant 14.2857141 : f32
      %45 = vector.broadcast %cst_27 : f32 to vector<8x128xf32>
      %46 = arith.mulf %35, %45 : vector<8x128xf32>
      %c0_28 = arith.constant 0 : index
      %c0_29 = arith.constant 0 : index
      %47 = vector.load %arg6[%c0_28, %c0_29] : memref<8x128xf32, #tpu.memory_space<vmem>>, vector<8x128xf32>
      tpu.vector_store %arg6[%c0_28, %c0_29], %46 {strides = array<i32>} : memref<8x128xf32, #tpu.memory_space<vmem>>, vector<8x128xf32>,
      %cst_30 = arith.constant dense<0.000000e+00> : vector<8x8xf32>
      %48 = tpu.matmul %46, %43, %cst_30 {dimension_numbers = #tpu.dot_dimension_numbers<[1], [1], [0], [0], [0, 0, 1, 0], [], []>} : vector<8x128xf32>, vector<8x128xf32>, vector<8x8xf32> -> vector<8x8xf32>
      %cst_31 = arith.constant dense<0xFF800000> : vector<8xf32>
      %49 = vector.multi_reduction <maximumf>, %48, %cst_31 [1] : vector<8x8xf32> to vector<8xf32>
      %50 = vector.shape_cast %49 : vector<8xf32> to vector<8x1xf32>
      %c0_32 = arith.constant 0 : index
      %c0_33 = arith.constant 0 : index
      %51 = vector.load %arg7[%c0_32, %c0_33] : memref<8x1xf32, #tpu.memory_space<vmem>>, vector<8x1xf32>
      tpu.vector_store %arg7[%c0_32, %c0_33], %50 {strides = array<i32>} : memref<8x1xf32, #tpu.memory_space<vmem>>, vector<8x1xf32>,
      %52 = vector.broadcast %50 : vector<8x1xf32> to vector<8x8xf32>
      %53 = arith.subf %48, %52 : vector<8x8xf32>
      %54 = math.exp %53 : vector<8x8xf32>
      %cst_34 = arith.constant dense<0.000000e+00> : vector<8xf32>
      %55 = vector.multi_reduction <add>, %54, %cst_34 [1] : vector<8x8xf32> to vector<8xf32>
      %56 = vector.shape_cast %55 : vector<8xf32> to vector<8x1xf32>
      %c0_35 = arith.constant 0 : index
      %c0_36 = arith.constant 0 : index
      %57 = vector.load %arg8[%c0_35, %c0_36] : memref<8x1xf32, #tpu.memory_space<vmem>>, vector<8x1xf32>
      tpu.vector_store %arg8[%c0_35, %c0_36], %56 {strides = array<i32>} : memref<8x1xf32, #tpu.memory_space<vmem>>, vector<8x1xf32>,
      %58 = vector.extract_strided_slice %48 {offsets = [0, 0], sizes = [8, 1], strides = [1, 1]} : vector<8x8xf32> to vector<8x1xf32>
      %c0_37 = arith.constant 0 : index
      %c0_38 = arith.constant 0 : index
      %59 = vector.load %arg9[%c0_37, %c0_38] : memref<8x1xf32, #tpu.memory_space<vmem>>, vector<8x1xf32>
      tpu.vector_store %arg9[%c0_37, %c0_38], %58 {strides = array<i32>} : memref<8x1xf32, #tpu.memory_space<vmem>>, vector<8x1xf32>,
    } else {
    }
    %c0 = arith.constant 0 : index
    %c0_1 = arith.constant 0 : index
    %3 = vector.load %arg3[%c0, %c0_1] : memref<128x128xf32, #tpu.memory_space<vmem>>, vector<128x128xf32>
    %c0_2 = arith.constant 0 : index
    %c0_3 = arith.constant 0 : index
    %4 = vector.load %arg6[%c0_2, %c0_3] : memref<8x128xf32, #tpu.memory_space<vmem>>, vector<8x128xf32>
    %cst = arith.constant dense<0.000000e+00> : vector<8x128xf32>
    %5 = tpu.matmul %4, %3, %cst {dimension_numbers = #tpu.dot_dimension_numbers<[1], [1], [0], [0], [0, 0, 1, 0], [], []>} : vector<8x128xf32>, vector<128x128xf32>, vector<8x128xf32> -> vector<8x128xf32>
    %cst_4 = arith.constant dense<0xFF800000> : vector<8xf32>
    %6 = vector.multi_reduction <maximumf>, %5, %cst_4 [1] : vector<8x128xf32> to vector<8xf32>
    %7 = vector.shape_cast %6 : vector<8xf32> to vector<8x1xf32>
    %c0_5 = arith.constant 0 : index
    %c0_6 = arith.constant 0 : index
    %8 = vector.load %arg7[%c0_5, %c0_6] : memref<8x1xf32, #tpu.memory_space<vmem>>, vector<8x1xf32>
    %9 = arith.maximumf %8, %7 : vector<8x1xf32>
    %c0_7 = arith.constant 0 : index
    %c0_8 = arith.constant 0 : index
    %10 = vector.load %arg8[%c0_7, %c0_8] : memref<8x1xf32, #tpu.memory_space<vmem>>, vector<8x1xf32>
    %c0_9 = arith.constant 0 : index
    %c0_10 = arith.constant 0 : index
    %11 = vector.load %arg7[%c0_9, %c0_10] : memref<8x1xf32, #tpu.memory_space<vmem>>, vector<8x1xf32>
    %12 = arith.subf %11, %9 : vector<8x1xf32>
    %13 = math.exp %12 : vector<8x1xf32>
    %14 = arith.mulf %10, %13 : vector<8x1xf32>
    %15 = vector.broadcast %9 : vector<8x1xf32> to vector<8x128xf32>
    %16 = arith.subf %5, %15 : vector<8x128xf32>
    %17 = math.exp %16 : vector<8x128xf32>
    %cst_11 = arith.constant dense<0.000000e+00> : vector<8xf32>
    %18 = vector.multi_reduction <add>, %17, %cst_11 [1] : vector<8x128xf32> to vector<8xf32>
    %19 = vector.shape_cast %18 : vector<8xf32> to vector<8x1xf32>
    %20 = arith.addf %14, %19 : vector<8x1xf32>
    %c0_12 = arith.constant 0 : index
    %c0_13 = arith.constant 0 : index
    %21 = vector.load %arg8[%c0_12, %c0_13] : memref<8x1xf32, #tpu.memory_space<vmem>>, vector<8x1xf32>
    tpu.vector_store %arg8[%c0_12, %c0_13], %20 {strides = array<i32>} : memref<8x1xf32, #tpu.memory_space<vmem>>, vector<8x1xf32>,
    %c0_14 = arith.constant 0 : index
    %c0_15 = arith.constant 0 : index
    %22 = vector.load %arg7[%c0_14, %c0_15] : memref<8x1xf32, #tpu.memory_space<vmem>>, vector<8x1xf32>
    tpu.vector_store %arg7[%c0_14, %c0_15], %9 {strides = array<i32>} : memref<8x1xf32, #tpu.memory_space<vmem>>, vector<8x1xf32>,
    %c3_i32 = arith.constant 3 : i32
    %23 = arith.cmpi eq, %arg0, %c3_i32 : i32
    %24 = arith.extui %23 : i1 to i32
    %c0_i32_16 = arith.constant 0 : i32
    %25 = arith.cmpi ne, %24, %c0_i32_16 : i32
    scf.if %25 {
      %c0_17 = arith.constant 0 : index
      %c0_18 = arith.constant 0 : index
      %26 = vector.load %arg7[%c0_17, %c0_18] : memref<8x1xf32, #tpu.memory_space<vmem>>, vector<8x1xf32>
      %c0_19 = arith.constant 0 : index
      %c0_20 = arith.constant 0 : index
      %27 = vector.load %arg8[%c0_19, %c0_20] : memref<8x1xf32, #tpu.memory_space<vmem>>, vector<8x1xf32>
      %28 = math.log %27 : vector<8x1xf32>
      %29 = arith.addf %26, %28 : vector<8x1xf32>
      %c0_21 = arith.constant 0 : index
      %c0_22 = arith.constant 0 : index
      %30 = vector.load %arg9[%c0_21, %c0_22] : memref<8x1xf32, #tpu.memory_space<vmem>>, vector<8x1xf32>
      %31 = arith.subf %29, %30 : vector<8x1xf32>
      %cst_23 = arith.constant dense<0.000000e+00> : vector<1xf32>
      %32 = vector.multi_reduction <add>, %31, %cst_23 [0] : vector<8x1xf32> to vector<1xf32>
      %33 = vector.shape_cast %32 : vector<1xf32> to vector<1x1xf32>
      %cst_24 = arith.constant 8.000000e+00 : f32
      %34 = vector.broadcast %cst_24 : f32 to vector<1x1xf32>
      %35 = arith.divf %33, %34 : vector<1x1xf32>
      %c0_25 = arith.constant 0 : index
      %c0_26 = arith.constant 0 : index
      %36 = vector.load %arg4[%c0_25, %c0_26] : memref<1x1xf32, #tpu.memory_space<vmem>>, vector<1x1xf32>
      tpu.vector_store %arg4[%c0_25, %c0_26], %35 {strides = array<i32>} : memref<1x1xf32, #tpu.memory_space<vmem>>, vector<1x1xf32>,
    } else {
    }
    return
  }
  func.func @transform_0(%arg0: i32) -> (i32, i32) {
    %c0_i32 = arith.constant 0 : i32
    %c0_i32_0 = arith.constant 0 : i32
    %c0_i32_1 = arith.constant 0 : i32
    return %c0_i32, %c0_i32_0 : i32, i32
  }
  func.func @transform_1(%arg0: i32) -> (i32, i32) {
    %c0_i32 = arith.constant 0 : i32
    %c0_i32_0 = arith.constant 0 : i32
    %c0_i32_1 = arith.constant 0 : i32
    return %c0_i32, %c0_i32_0 : i32, i32
  }
  func.func @transform_2(%arg0: i32) -> (i32, i32) {
    %c0_i32 = arith.constant 0 : i32
    %c0_i32_0 = arith.constant 0 : i32
    return %arg0, %c0_i32 : i32, i32
  }
  func.func @transform_3(%arg0: i32) -> (i32, i32) {
    %c0_i32 = arith.constant 0 : i32
    %c0_i32_0 = arith.constant 0 : i32
    %c0_i32_1 = arith.constant 0 : i32
    return %c0_i32, %c0_i32_0 : i32, i32
  }
  func.func @transform_4(%arg0: i32) -> (i32, i32) {
    %c0_i32 = arith.constant 0 : i32
    %c0_i32_0 = arith.constant 0 : i32
    %c0_i32_1 = arith.constant 0 : i32
    return %c0_i32, %c0_i32_0 : i32, i32
  }
}

</mosaic_0001>

<bundles_post_ra>
// kernel: tpu_custom_call.1
= control target key start
LH: loop header
LB: loop body
LE: loop exit
PB: predicated region body
PF: predicated region fallthrough
CT: control target
= control target key end

     0   :  { %10 = vsyncpa [#allocation7], 0  ;;  %s998_s0 = inlined_call_operand.hbm [shape: f32[8,128], index: 0, kind: input, shape index: {}]   ;;  %s999_s1 = inlined_call_operand.hbm [shape: f32[8,128], index: 1, kind: input, shape index: {}]   ;;  %s1000_s2 = inlined_call_operand.hbm [shape: f32[512,128], index: 2, kind: input, shape index: {}]   ;;  %s1001_s3 = inlined_call_operand.hbm [shape: f32[1,1], index: 3, kind: output, shape index: {0}]   ;;  %s1002_s4 = inlined_call_operand.hbm [shape: f32[8,128], index: 4, kind: output, shape index: {1}]  }
   0x1   :  { %11 = vsyncpa [#allocation10], 0 }
   0x2   :  { %12 = vsyncpa [#allocation8], 0 }
   0x3   :  { %13 = vsyncpa [#allocation14], 0  ;;  %s841_s15 = smov 0   ;;  %s843_s16 = smov 0  }
   0x4   :  { %s845_s17 = smov 0   ;;  %s847_s18 = smov 0  }
   0x5 LB: > { %s860_s19 = sadd.s32 4294967295, %s806_s18   ;;  %s863_s20 = sadd.s32 1, %s806_s18   ;;  %s806_s18 = sphi %s847_s18, %s1010_s18   ;;  %s802_s17 = sphi %s845_s17, %s1009_s17   ;;  %s798_s16 = sphi %s843_s16, %s1008_s16   ;;  %s794_s15 = sphi %s841_s15, %s1007_s15  }
   0x6   : > { %s65_s21 = ssub.s32 %s806_s18, %s863_s20  ;;  %s68_s22 = sadd.s32 1, %s802_s17 }
   0x7   : > { %p66_p0 = scmp.eq.s32.totalorder %s65_s21, 0  ;;  %p75_p1 = scmp.ne.s32.totalorder %s802_s17, %s798_s16 }
   0x8   : > { %p76_p2 = scmp.eq.s32.totalorder %s806_s18, 0  ;;  %p81_p3 = scmp.ne.s32.totalorder %s798_s16, %s794_s15 }
   0x9   : > { %s873_s23 = scalar_select %p66_p0, %s802_s17, %s68_s22  }
   0xa   : > { %p875_p4 = por %p76_p2, %p75_p1  ;;  %p82_p5 = scmp.eq.s32.totalorder %s860_s19, 0 }
   0xb   : > { %p497_p6 = scmp.ge.s32.totalorder %s806_s18, 1  ;;  %p134_p7 = scmp.lt.s32.totalorder %s806_s18, 5 }
   0xc   : > { %p884_p8 = por %p82_p5, %p81_p3  ;;  %p498_p9 = scmp.ne.s32.totalorder %s860_s19, 0 }
   0xd   : > { %p889_p10 = pnand %p497_p6, %p134_p7  ;;  %s146_s29 = sshll.u32 %s998_s0, 4  ;;  %s147_s29 = int_to_ptr.hbm [resolvable:$true] %s146_s29 }
   0xe   : > { %s808_s30 = smov [#allocation6]   ;;  %p548_p13 = scmp.lt.s32.totalorder %s806_s18, 4 }
   0xf   : > { %p535_p11 = pneg %p889_p10  ;;  %s148_s5 = sshll.u32 %s808_s30, 4  ;;  %s149_s5 = int_to_ptr.vmem [resolvable:$true] %s148_s5 }
  0x10   : > { %s158_s8 = sshll.u32 %s999_s1, 4  ;;  %p906_p0 = pnand %p548_p13, %p875_p4  ;;  %s159_s8 = int_to_ptr.hbm [resolvable:$true] %s158_s8 }
  0x11   : > { %p536_p12 = pnand %p535_p11, %p82_p5  ;;  %s809_s10 = smov [#allocation9]  }
  0x12   : > { %s160_s11 = sshll.u32 %s809_s10, 4  ;;  %s171_s12 = sand.u32 1, %s806_s18   ;;  %s161_s11 = int_to_ptr.vmem [resolvable:$true] %s160_s11 }
  0x13   : > { %538 = dma.hbm_to_vmem [thread:$0]  (!%p536_p12), %s147_s29, 128, %s149_s5, [#allocation7]  }
  0x14   : > { %541 = dma.hbm_to_vmem [thread:$0]  (!%p536_p12), %s159_s8, 128, %s161_s11, [#allocation10]  }
  0x15   : > { %s173_s13 = sand.u32 1, %s802_s17   ;;  %s516_s14 = sshll.u32 %s806_s18, 7 }
  0x16   : > { %s501_s15 = sshll.u32 %s173_s13, 7  ;;  %s180_s27 = scalar_lea.hbm %s1000_s2, %s516_s14 }
  0x17   : > { %s181_s24 = sshll.u32 %s180_s27, 4  ;;  %s175_s28 = scalar_lea.vmem [#allocation11], %s501_s15  ;;  %s182_s24 = int_to_ptr.hbm [resolvable:$true] %s181_s24 }
  0x18   : > { %s183_s30 = sshll.u32 %s175_s28, 4  ;;  %s172_s29 = scalar_lea.sflag [#allocation7], %s171_s12  ;;  %s184_s30 = int_to_ptr.vmem [resolvable:$true] %s183_s30 }
  0x19   : > { %s670_s5 = sshra.s32 %s182_s24, 4  ;;  %p674_p2 = pneg %p906_p0  ;;  %s671_s5 = int_to_ptr.hbm [resolvable:$true] %s670_s5 }
  0x1a   : > { %s672_s6 = scalar_lea.hbm %s671_s5, 128  ;;  %s677_s8 = scalar_lea.hbm %s1000_s2, 512 }
  0x1b   : > { %p673_p1 = scmp.ne.s32.totalorder %s671_s5, %s672_s6  ;;  %p678_p6 = scmp.lt.s32.totalorder %s671_s5, %s1000_s2 }
  0x1c   : > { %p679_p7 = scmp.lt.s32.totalorder %s677_s8, %s672_s6 }
  0x1d   : > { %p675_p3 = pnand %p674_p2, %p673_p1 }
  0x1e   : > { %p680_p11 = por %p679_p7, %p678_p6 }
  0x1f   : > { %p676_p4 = pneg %p675_p3 }
  0x21   : > { %p681_p12 = pnand %p680_p11, %p676_p4 }
  0x23   : > { %684 = shalt.err (!%p681_p12)
}
  0x24   : > { %s810_s12 = smov 128   ;;  %s811_s13 = smov 8  }
  0x25   : > { %545 = dma.hbm_to_vmem [thread:$0]  (!%p906_p0), %s182_s24, 2048, %s184_s30, %s172_s29, %s810_s12, %s810_s12, %s811_s13  }
  0x26   : > { %195 = sbr.rel (%p889_p10) target bundleno = 1177 (0x499), region = 32 }
  0x2b   : > { %773 = dma.done.wait (%p82_p5), [#allocation7], 128  }
  0x2c   : > { %775 = vsyncadd (%p82_p5), [#allocation7], 4294967168 }
  0x2d   : > { %777 = dma.done.wait (%p82_p5), [#allocation10], 128  }
  0x2e   : > { %779 = vsyncadd (%p82_p5), [#allocation10], 4294967168  ;;  %s207_s9 = sand.u32 1, %s860_s19   ;;  %s209_s14 = sand.u32 1, %s798_s16  }
  0x2f   : > { %s507_s15 = sshll.u32 %s209_s14, 7  ;;  %s208_s26 = scalar_lea.sflag [#allocation7], %s207_s9 }
  0x30   : > { %s938_s21 = scalar_lea.vmem [#allocation11], %s507_s15 }
  0x31   : > { %781 = dma.done.wait (%p884_p8), %s208_s26, 2048  }
  0x32   : > { %783 = vsyncadd (%p884_p8), %s208_s26, 4294965248  ;;  %236 = sbr.rel (%p498_p9) target bundleno = 578 (0x242), region = 48 }
  0x37   : > { %v238_v0 = vld [vmem:[#allocation9] sm:$0xff]  ;;  %v237_v2 = vld [vmem:[#allocation6] sm:$0xff]  ;;  %vm296_vm6 = vcmask 7168   ;;  %vm292_vm7 = vcmask 64512  }
  0x38   : > { %v254_v1 = vmul.f32 %v238_v0, %v238_v0  ;;  %v239_v3 = vmul.f32 %v237_v2, %v237_v2 }
  0x3a   : > { %255 = vadd.xlane.f32.xlu0 %v254_v1 }
  0x42   : > { %240 = vadd.xlane.f32.xlu0 %v239_v3 }
  0xad   : > { %v256_v4 = vpop.xlane.xlu0 %255 }
  0xae   : > { %v257_v5 = vmax.f32 %v256_v4, 1e-24 }
  0xb0   : > { %595 = vrsqrt.f32 %v257_v5  ;;  %vm264_vm1 = vweird.f32 %v257_v5 }
  0xb5   : > { %v241_v6 = vpop.xlane.xlu0 %240 }
  0xb6   : > { %v596_v7 = vpop.eup %595  ;;  %v242_v8 = vmax.f32 %v241_v6, 1e-24 }
  0xb7   : > { %v259_v9 = vmul.f32 %v596_v7, %v257_v5  ;;  %vm265_vm0 = vweird.f32 %v596_v7 }
  0xb8   : > { %597 = vrsqrt.f32 %v242_v8  ;;  %vm266_vm2 = vmor %vm264_vm1, %vm265_vm0  ;;  %vm249_vm4 = vweird.f32 %v242_v8 }
  0xb9   : > { %v260_v10 = vmul.f32 %v596_v7, %v259_v9 }
  0xbb   : > { %v261_v11 = vmul.f32 0.5, %v260_v10 }
  0xbd   : > { %v262_v12 = vsub.f32 1.5, %v261_v11 }
  0xbe   : > { %v598_v13 = vpop.eup %597 }
  0xbf   : > { %v244_v14 = vmul.f32 %v598_v13, %v242_v8  ;;  %v263_v15 = vmul.f32 %v596_v7, %v262_v12  ;;  %vm250_vm3 = vweird.f32 %v598_v13 }
  0xc0   : > { %vm251_vm5 = vmor %vm249_vm4, %vm250_vm3 }
  0xc1   : > { %v245_v16 = vmul.f32 %v598_v13, %v244_v14  ;;  %v267_v17 = vsel %vm266_vm2, %v596_v7, %v263_v15 }
  0xc2   : > { %v268_v18 = vmul.f32 %v267_v17, %v238_v0 }
  0xc3   : > { %v246_v19 = vmul.f32 0.5, %v245_v16 }
  0xc4   : > { %269 = vst [vmem:[#allocation13] sm:$0xff] %v268_v18  ;;  %287 = vmatpush.xpose.msra.mxu0 %v268_v18 }
  0xc5   : > { %v247_v20 = vsub.f32 1.5, %v246_v19 }
  0xc7   : > { %v248_v21 = vmul.f32 %v598_v13, %v247_v20 }
  0xc9   : > { %v252_v22 = vsel %vm251_vm5, %v598_v13, %v248_v21 }
  0xca   : > { %v253_v23 = vmul.f32 %v252_v22, %v237_v2 }
  0xcc   : > { %v270_v24 = vmul.f32 14.285714, %v253_v23 }
  0xce   : > { %271 = vst [vmem:[#allocation2] sm:$0xff] %v270_v24  ;;  %288 = vmatmul.f32.vlgmr.msra.gmra.mxu0 %v270_v24 }
 0x14b   : > { %v289_v25 = vpop.f32.mrf.mxu0 }
 0x14c   : > { %305 = vst.msk [vmem:[#allocation5] sm:$0xff] %vm296_vm6, %v289_v25  ;;  %v293_v26 = vsel %vm292_vm7, %v289_v25, -inf }
 0x14d   : > { %294 = vmax.xlane.f32.xlu1 %v293_v26 }
 0x1c0   : > { %v295_v27 = vpop.xlane.xlu1 %294 }
 0x1c1   : > { %297 = vst.msk [vmem:[#allocation3] sm:$0xff] %vm296_vm6, %v295_v27  ;;  %v298_v28 = vsub.f32 %v289_v25, %v295_v27 }
 0x1c3   : > { %v299_v29 = vmul.f32 1.442695, %v298_v28 }
 0x1c5   : > { %599 = vpow2.f32 %v299_v29 }
 0x1cb   : > { %v600_v30 = vpop.eup %599 }
 0x1cc   : > { %v301_v31 = vsel %vm292_vm7, %v600_v30, 0.0 }
 0x1cd   : > { %302 = vadd.xlane.f32.xlu1 %v301_v31 }
 0x240   : > { %v303_v32 = vpop.xlane.xlu1 %302 }
 0x241   : > { %304 = vst.msk [vmem:[#allocation4] sm:$0xff] %vm296_vm6, %v303_v32 }
 0x242 PF: > { %v321_v33 = vld [vmem:[%s938_s21 + $0x78] sm:$0xff]  ;;  %v320_v34 = vld [vmem:[%s938_s21 + $0x70] sm:$0xff]  ;;  %v319_v35 = vld [vmem:[%s938_s21 + $0x68] sm:$0xff]  ;;  %v812_v51 = vmov 0   ;;  %vm363_vm8 = vcmask 7168   ;;  %p509_p5 = scmp.ne.s32.totalorder %s860_s19, 3 }
 0x243   : > { %323 = vmatpush.xpose.msra.mxu0 %v321_v33  ;;  %v318_v36 = vld [vmem:[%s938_s21 + $0x60] sm:$0xff]  ;;  %v317_v37 = vld [vmem:[%s938_s21 + $0x58] sm:$0xff]  ;;  %v316_v38 = vld [vmem:[%s938_s21 + $0x50] sm:$0xff]  ;;  %601 = vset.pattern.permute.xlu0 %v812_v51 }
 0x244   : > { %v315_v39 = vld [vmem:[%s938_s21 + $0x48] sm:$0xff]  ;;  %v314_v40 = vld [vmem:[%s938_s21 + $0x40] sm:$0xff]  ;;  %v313_v41 = vld [vmem:[%s938_s21 + $0x38] sm:$0xff] }
 0x245   : > { %v312_v42 = vld [vmem:[%s938_s21 + $0x30] sm:$0xff]  ;;  %v311_v43 = vld [vmem:[%s938_s21 + $0x28] sm:$0xff]  ;;  %v310_v44 = vld [vmem:[%s938_s21 + $0x20] sm:$0xff] }
 0x246   : > { %v309_v45 = vld [vmem:[%s938_s21 + $0x18] sm:$0xff]  ;;  %v308_v46 = vld [vmem:[%s938_s21 + $0x10] sm:$0xff]  ;;  %v307_v47 = vld [vmem:[%s938_s21 + $0x8] sm:$0xff] }
 0x247   : > { %324 = vmatpush.xpose.msra.mxu0 %v320_v34  ;;  %v306_v48 = vld [vmem:[%s938_s21] sm:$0xff]  ;;  %v322_v49 = vld [vmem:[#allocation2] sm:$0xff]  ;;  %v345_v52 = vld [vmem:[#allocation3] sm:$0xff] }
 0x248   : > { %v347_v62 = vld [vmem:[#allocation4] sm:$0xff] }
 0x24b   : > { %325 = vmatpush.xpose.msra.mxu0 %v319_v35 }
 0x24f   : > { %326 = vmatpush.xpose.msra.mxu0 %v318_v36 }
 0x253   : > { %327 = vmatpush.xpose.msra.mxu0 %v317_v37 }
 0x257   : > { %328 = vmatpush.xpose.msra.mxu0 %v316_v38 }
 0x25b   : > { %329 = vmatpush.xpose.msra.mxu0 %v315_v39 }
 0x25f   : > { %330 = vmatpush.xpose.msra.mxu0 %v314_v40 }
 0x263   : > { %331 = vmatpush.xpose.msra.mxu0 %v313_v41 }
 0x267   : > { %332 = vmatpush.xpose.msra.mxu0 %v312_v42 }
 0x26b   : > { %333 = vmatpush.xpose.msra.mxu0 %v311_v43 }
 0x26f   : > { %334 = vmatpush.xpose.msra.mxu0 %v310_v44 }
 0x273   : > { %335 = vmatpush.xpose.msra.mxu0 %v309_v45 }
 0x277   : > { %336 = vmatpush.xpose.msra.mxu0 %v308_v46 }
 0x27b   : > { %337 = vmatpush.xpose.msra.mxu0 %v307_v47 }
 0x27f   : > { %338 = vmatpush.xpose.msra.mxu0 %v306_v48 }
 0x282   : > { %339 = vmatmul.f32.vlgmr.msra.gmra.mxu0 %v322_v49 }
 0x2ff   : > { %v340_v50 = vpop.f32.mrf.mxu0 }
 0x300   : > { %343 = vmax.xlane.f32.xlu0 %v340_v50 }
 0x373   : > { %v344_v53 = vpop.xlane.xlu0 %343 }
 0x374   : > { %v346_v54 = vmax.f32 %v345_v52, %v344_v53 }
 0x376   : > { %v348_v55 = vsub.f32 %v345_v52, %v346_v54  ;;  %365 = vst.msk [vmem:[#allocation3] sm:$0xff] %vm363_vm8, %v346_v54  ;;  %354 = vperm.xlu0 %601, %v346_v54  }
 0x378   : > { %v349_v60 = vmul.f32 1.442695, %v348_v55 }
 0x3e8   : > { %v355_v56 = vpop.permute.xlu0 %354 }
 0x3e9   : > { %v357_v57 = vsub.f32 %v340_v50, %v355_v56 }
 0x3eb   : > { %v358_v58 = vmul.f32 1.442695, %v357_v57 }
 0x3ed   : > { %602 = vpow2.f32 %v358_v58 }
 0x3ee   : > { %604 = vpow2.f32 %v349_v60 }
 0x3f3   : > { %v603_v59 = vpop.eup %602 }
 0x3f4   : > { %360 = vadd.xlane.f32.xlu1 %v603_v59  ;;  %v605_v61 = vpop.eup %604 }
 0x3f5   : > { %v351_v63 = vmul.f32 %v605_v61, %v347_v62 }
 0x466   : > { %369 = sbr.rel (%p509_p5) target bundleno = 1167 (0x48f), region = 52 }
 0x467   : > { %v361_v0 = vpop.xlane.xlu1 %360 }
 0x468   : > { %v362_v1 = vadd.f32 %v361_v0, %v351_v63 }
 0x46a   : > { %364 = vst.msk [vmem:[#allocation4] sm:$0xff] %vm363_vm8, %v362_v1 }
 0x46b   : > { %v813_v3 = vmov 8.0   ;;  %v370_v5 = vld [vmem:[#allocation3] sm:$0xff]  ;;  %v375_v8 = vld [vmem:[#allocation5] sm:$0xff]  ;;  %vm392_vm10 = vcmask 0  }
 0x471   : > { %v371_v2 = vld [vmem:[#allocation4] sm:$0xff] }
 0x472   : > { %606 = vlog2.f32 %v371_v2 }
 0x473   : > { %608 = vrcp.f32 %v813_v3 }
 0x478   : > { %v607_v4 = vpop.eup %606 }
 0x479   : > { %v609_v6 = vpop.eup %608  ;;  %v373_v7 = vmul.f32 0.6931472, %v607_v4 }
 0x47a   : > { %v385_v9 = vmul.f32 8.0, %v609_v6  ;;  %vm389_vm9 = vweird.f32 %v609_v6 }
 0x47b   : > { %v374_v10 = vadd.f32 %v373_v7, %v370_v5 }
 0x47c   : > { %v386_v12 = vsub.f32 1.0, %v385_v9 }
 0x47d   : > { %v376_v11 = vsub.f32 %v374_v10, %v375_v8 }
 0x47e   : > { %v387_v15 = vmul.f32 %v609_v6, %v386_v12 }
 0x47f   : > { %v377_v13 = vsel %vm363_vm8, %v376_v11, 0.0 }
 0x480   : > { %v378_v14 = vrot.slane %v377_v13, 4  ;;  %v388_v18 = vadd.f32 %v609_v6, %v387_v15 }
 0x482   : > { %v379_v16 = vadd.f32 %v378_v14, %v377_v13  ;;  %v390_v21 = vsel %vm389_vm9, %v609_v6, %v388_v18 }
 0x484   : > { %v380_v17 = vrot.slane %v379_v16, 2 }
 0x486   : > { %v381_v19 = vadd.f32 %v380_v17, %v379_v16 }
 0x488   : > { %v382_v20 = vrot.slane %v381_v19, 1 }
 0x48a   : > { %v383_v22 = vadd.f32 %v382_v20, %v381_v19 }
 0x48c   : > { %v391_v23 = vmul.f32 %v390_v21, %v383_v22 }
 0x48e   : > { %393 = vst.msk [vmem:[#allocation12] sm:$0x1] %vm392_vm10, %v391_v23 }
 0x48f PF: > { %p551_p8 = scmp.eq.s32.totalorder %s860_s19, 3  ;;  %s814_s25 = smov [#allocation12]  }
 0x490   : > { %s400_s22 = sshll.u32 %s814_s25, 4  ;;  %s402_s28 = sshll.u32 %s1001_s3, 4  ;;  %s401_s22 = int_to_ptr.vmem [resolvable:$true] %s400_s22  ;;  %s403_s28 = int_to_ptr.hbm [resolvable:$true] %s402_s28 }
 0x491   : > { %528 = dma.vmem_to_hbm [thread:$0]  (%p551_p8), %s401_s22, 16, %s403_s28, [#allocation8]  }
 0x492   : > { %s414_s5 = sshll.u32 %s1002_s4, 4  ;;  %s815_s6 = smov [#allocation13]   ;;  %s415_s5 = int_to_ptr.hbm [resolvable:$true] %s414_s5 }
 0x493   : > { %s412_s18 = sshll.u32 %s815_s6, 4  ;;  %s413_s18 = int_to_ptr.vmem [resolvable:$true] %s412_s18 }
 0x494   : > { %530 = dma.vmem_to_hbm [thread:$0]  (%p551_p8), %s413_s18, 128, %s415_s5, [#allocation14]  }
 0x495   : > { %785 = dma.done.wait (%p551_p8), [#allocation8], 16  }
 0x496   : > { %787 = vsyncadd (%p551_p8), [#allocation8], 4294967280 }
 0x497   : > { %789 = dma.done.wait (%p551_p8), [#allocation14], 128  }
 0x498   : > { %791 = vsyncadd (%p551_p8), [#allocation14], 4294967168 }
 0x499 PF: > { %p16_p9 = scmp.ge.s32.totalorder %s863_s20, 6   ;;  %s1007_s15 = smov %s798_s16 }
 0x49a   : > { %s1008_s16 = smov %s802_s17  ;;  %s1009_s17 = smov %s873_s23 }
 0x49b   : > { %s1010_s18 = smov %s863_s20  ;;  %18 = sbr.rel (!%p16_p9) target bundleno = 5 (0x5), region = 92 }
 0x4a0   :  { %433 = vsyncpa [#allocation7], 1 }
 0x4a1   :  { %435 = vsyncpa [#allocation7 + $0x1], 1 }
 0x4a2   :  { %436 = vsyncpa [#allocation10], 1 }
 0x4a3   :  { %437 = vsyncpa [#allocation8], 1 }
 0x4a4   :  { %439 = vsyncpa [#allocation8 + $0x1], 1 }
 0x4a5   :  { %440 = vsyncpa [#allocation14], 1 }

</bundles_post_ra>
